<compile_context>
chip_gen: v7x
topology: tpu7x:2x2x1
jax: 0.10.0
libtpu: 0.0.40
codegen_flags: <defaults>
</compile_context>

<pallas_src>
import jax
import jax.numpy as jnp
from jax.experimental import pallas as pl
from jax.experimental.pallas import tpu as pltpu


def gaussian_policy_kernel(x_ref,
                           w1_ref, b1_ref,
                           w2_ref, b2_ref,
                           wh_ref, bh_ref,
                           out_ref):
    x = x_ref[...]

    # fc1 + ReLU
    h1 = jnp.dot(x, w1_ref[...], preferred_element_type=jnp.float32) + b1_ref[...]
    h1 = jnp.maximum(h1, 0.0)

    # fc2 + ReLU
    h2 = jnp.dot(h1, w2_ref[...], preferred_element_type=jnp.float32) + b2_ref[...]
    h2 = jnp.maximum(h2, 0.0)

    # Fused heads: one matmul producing [mean_logits | std_logits].
    z = jnp.dot(h2, wh_ref[...], preferred_element_type=jnp.float32) + bh_ref[...]

    act_dim = wh_ref.shape[1] // 2  # static
    col = jax.lax.broadcasted_iota(jnp.int32, z.shape, 1)
    # First half: tanh (mean). Second half: -relu (log_var).
    out_ref[...] = jnp.where(col < act_dim, jnp.tanh(z), -jnp.maximum(z, 0.0))


def gaussian_policy_forward(state, params, *, batch_tile=128):
    """state: (B, D) float32. params: dict of (in,out) weights and (1,out) biases.

    Returns (mean, log_var), each (B, act_dim) float32.
    """
    B, state_dim = state.shape
    act_dim = params["wm"].shape[1]

    # Fuse the two heads into one (h2, 2*act_dim) weight / (1, 2*act_dim) bias.
    wh = jnp.concatenate([params["wm"], params["ws"]], axis=1)
    bh = jnp.concatenate([params["bm"], params["bs"]], axis=1)

    # Batch tile: full batch when small; 128 rows per step at rollout scale.
    tb = B if B <= 128 else 128
    grid = (pl.cdiv(B, tb),)

    def resident(a):
        # Weights/biases: same block every grid step -> stay VMEM-resident.
        return pl.BlockSpec(a.shape, lambda i: (0, 0))

    in_specs = [
        pl.BlockSpec((tb, state_dim), lambda i: (i, 0)),  # streamed batch tile
        resident(params["w1"]), resident(params["b1"]),
        resident(params["w2"]), resident(params["b2"]),
        resident(wh), resident(bh),
    ]
    out_spec = pl.BlockSpec((tb, 2 * act_dim), lambda i: (i, 0))
    out_shape = jax.ShapeDtypeStruct((B, 2 * act_dim), jnp.float32)

    fused = pl.pallas_call(
        gaussian_policy_kernel,
        out_shape=out_shape,
        grid=grid,
        in_specs=in_specs,
        out_specs=out_spec,
        compiler_params=pltpu.CompilerParams(
            dimension_semantics=("parallel",)),
    )(state, params["w1"], params["b1"], params["w2"], params["b2"], wh, bh)

    return fused[:, :act_dim], fused[:, act_dim:]


def _xavier_uniform(key, fan_in, fan_out):
    bound = jnp.sqrt(6.0 / (fan_in + fan_out))
    # stored as (in, out), i.e. transposed PyTorch layout
    return jax.random.uniform(key, (fan_in, fan_out), jnp.float32, -bound, bound)


def _linear_bias(key, fan_in, fan_out):
    bound = 1.0 / jnp.sqrt(float(fan_in))
    return jax.random.uniform(key, (1, fan_out), jnp.float32, -bound, bound)


def make_params(key, state_dim, h1, h2, act_dim):
    ks = jax.random.split(key, 8)
    return {
        "w1": _xavier_uniform(ks[0], state_dim, h1),
        "b1": _linear_bias(ks[1], state_dim, h1),
        "w2": _xavier_uniform(ks[2], h1, h2),
        "b2": _linear_bias(ks[3], h1, h2),
        "wm": _xavier_uniform(ks[4], h2, act_dim),
        "bm": _linear_bias(ks[5], h2, act_dim),
        "ws": _xavier_uniform(ks[6], h2, act_dim),
        "bs": _linear_bias(ks[7], h2, act_dim),
    }


def reference_forward(state, p):
    h1 = jnp.maximum(state @ p["w1"] + p["b1"], 0.0)
    h2 = jnp.maximum(h1 @ p["w2"] + p["b2"], 0.0)
    mean = jnp.tanh(h2 @ p["wm"] + p["bm"])
    log_var = -jnp.maximum(h2 @ p["ws"] + p["bs"], 0.0)
    return mean, log_var


if __name__ == "__main__":
    key = jax.random.PRNGKey(0)
    k_state, k_params = jax.random.split(key)

    # params = {'l1': (32, 64), 'l2': (64, 64), 'l3': (64, 8)}
    batch, state_dim, h1, h2, act_dim = 8, 32, 64, 64, 8

    state = jax.random.normal(k_state, (batch, state_dim), jnp.float32)
    params = make_params(k_params, state_dim, h1, h2, act_dim)

    mean, log_var = gaussian_policy_forward(state, params)
    mean = jax.block_until_ready(mean)
    log_var = jax.block_until_ready(log_var)

    mean_ref, log_var_ref = reference_forward(state, params)
    assert mean.shape == (batch, act_dim) and log_var.shape == (batch, act_dim)
    assert jnp.allclose(mean, mean_ref, atol=1e-5, rtol=1e-5)
    assert jnp.allclose(log_var, log_var_ref, atol=1e-5, rtol=1e-5)

    print("KERNEL_OK")
</pallas_src>

<mosaic_0001>
module attributes {stable_mosaic.version = 11 : i64} {
  func.func @gaussian_policy_kernel(%arg0: i32, %arg1: memref<8x32xf32, #tpu.memory_space<vmem>>, %arg2: memref<32x64xf32, #tpu.memory_space<vmem>>, %arg3: memref<1x64xf32, #tpu.memory_space<vmem>>, %arg4: memref<64x64xf32, #tpu.memory_space<vmem>>, %arg5: memref<1x64xf32, #tpu.memory_space<vmem>>, %arg6: memref<64x16xf32, #tpu.memory_space<vmem>>, %arg7: memref<1x16xf32, #tpu.memory_space<vmem>>, %arg8: memref<8x16xf32, #tpu.memory_space<vmem>>) attributes {dimension_semantics = [#tpu.dimension_semantics<parallel>], iteration_bounds = array<i64: 1>, scalar_prefetch = 0 : i64, scratch_operands = 0 : i64, tpu.core_type = #tpu.core_type<tc>, window_params = [{transform_indices = @transform_0, window_bounds = array<i64: 8, 32>}, {pipeline_mode = #tpu.pipeline_mode<synchronous>, transform_indices = @transform_1, window_bounds = array<i64: 32, 64>}, {pipeline_mode = #tpu.pipeline_mode<synchronous>, transform_indices = @transform_2, window_bounds = array<i64: 1, 64>}, {pipeline_mode = #tpu.pipeline_mode<synchronous>, transform_indices = @transform_3, window_bounds = array<i64: 64, 64>}, {pipeline_mode = #tpu.pipeline_mode<synchronous>, transform_indices = @transform_4, window_bounds = array<i64: 1, 64>}, {pipeline_mode = #tpu.pipeline_mode<synchronous>, transform_indices = @transform_5, window_bounds = array<i64: 64, 16>}, {pipeline_mode = #tpu.pipeline_mode<synchronous>, transform_indices = @transform_6, window_bounds = array<i64: 1, 16>}, {transform_indices = @transform_7, window_bounds = array<i64: 8, 16>}]} {
    %c0 = arith.constant 0 : index
    %c0_0 = arith.constant 0 : index
    %0 = vector.load %arg1[%c0, %c0_0] : memref<8x32xf32, #tpu.memory_space<vmem>>, vector<8x32xf32>
    %c0_1 = arith.constant 0 : index
    %c0_2 = arith.constant 0 : index
    %1 = vector.load %arg2[%c0_1, %c0_2] : memref<32x64xf32, #tpu.memory_space<vmem>>, vector<32x64xf32>
    %cst = arith.constant dense<0.000000e+00> : vector<8x64xf32>
    %2 = tpu.matmul %0, %1, %cst {dimension_numbers = #tpu.dot_dimension_numbers<[1], [0], [0], [1], [0, 0, 1, 1], [], []>} : vector<8x32xf32>, vector<32x64xf32>, vector<8x64xf32> -> vector<8x64xf32>
    %c0_3 = arith.constant 0 : index
    %c0_4 = arith.constant 0 : index
    %3 = vector.load %arg3[%c0_3, %c0_4] : memref<1x64xf32, #tpu.memory_space<vmem>>, vector<1x64xf32>
    %4 = vector.broadcast %3 : vector<1x64xf32> to vector<8x64xf32>
    %5 = arith.addf %2, %4 : vector<8x64xf32>
    %cst_5 = arith.constant 0.000000e+00 : f32
    %6 = vector.broadcast %cst_5 : f32 to vector<8x64xf32>
    %7 = arith.maximumf %5, %6 : vector<8x64xf32>
    %c0_6 = arith.constant 0 : index
    %c0_7 = arith.constant 0 : index
    %8 = vector.load %arg4[%c0_6, %c0_7] : memref<64x64xf32, #tpu.memory_space<vmem>>, vector<64x64xf32>
    %cst_8 = arith.constant dense<0.000000e+00> : vector<8x64xf32>
    %9 = tpu.matmul %7, %8, %cst_8 {dimension_numbers = #tpu.dot_dimension_numbers<[1], [0], [0], [1], [0, 0, 1, 1], [], []>} : vector<8x64xf32>, vector<64x64xf32>, vector<8x64xf32> -> vector<8x64xf32>
    %c0_9 = arith.constant 0 : index
    %c0_10 = arith.constant 0 : index
    %10 = vector.load %arg5[%c0_9, %c0_10] : memref<1x64xf32, #tpu.memory_space<vmem>>, vector<1x64xf32>
    %11 = vector.broadcast %10 : vector<1x64xf32> to vector<8x64xf32>
    %12 = arith.addf %9, %11 : vector<8x64xf32>
    %cst_11 = arith.constant 0.000000e+00 : f32
    %13 = vector.broadcast %cst_11 : f32 to vector<8x64xf32>
    %14 = arith.maximumf %12, %13 : vector<8x64xf32>
    %c0_12 = arith.constant 0 : index
    %c0_13 = arith.constant 0 : index
    %15 = vector.load %arg6[%c0_12, %c0_13] : memref<64x16xf32, #tpu.memory_space<vmem>>, vector<64x16xf32>
    %cst_14 = arith.constant dense<0.000000e+00> : vector<8x16xf32>
    %16 = tpu.matmul %14, %15, %cst_14 {dimension_numbers = #tpu.dot_dimension_numbers<[1], [0], [0], [1], [0, 0, 1, 1], [], []>} : vector<8x64xf32>, vector<64x16xf32>, vector<8x16xf32> -> vector<8x16xf32>
    %c0_15 = arith.constant 0 : index
    %c0_16 = arith.constant 0 : index
    %17 = vector.load %arg7[%c0_15, %c0_16] : memref<1x16xf32, #tpu.memory_space<vmem>>, vector<1x16xf32>
    %18 = vector.broadcast %17 : vector<1x16xf32> to vector<8x16xf32>
    %19 = arith.addf %16, %18 : vector<8x16xf32>
    %20 = tpu.iota {dimensions = array<i32: 1>} : vector<8x16xi32>
    %c8_i32 = arith.constant 8 : i32
    %21 = vector.broadcast %c8_i32 : i32 to vector<8x16xi32>
    %22 = arith.cmpi slt, %20, %21 : vector<8x16xi32>
    %23 = math.tanh %19 : vector<8x16xf32>
    %cst_17 = arith.constant 0.000000e+00 : f32
    %24 = vector.broadcast %cst_17 : f32 to vector<8x16xf32>
    %25 = arith.maximumf %19, %24 : vector<8x16xf32>
    %cst_18 = arith.constant 0.000000e+00 : f32
    %26 = vector.broadcast %cst_18 : f32 to vector<8x16xf32>
    %27 = arith.subf %26, %25 : vector<8x16xf32>
    %28 = arith.select %22, %23, %27 : vector<8x16xi1>, vector<8x16xf32>
    %c0_19 = arith.constant 0 : index
    %c0_20 = arith.constant 0 : index
    %29 = vector.load %arg8[%c0_19, %c0_20] : memref<8x16xf32, #tpu.memory_space<vmem>>, vector<8x16xf32>
    tpu.vector_store %arg8[%c0_19, %c0_20], %28 {strides = array<i32>} : memref<8x16xf32, #tpu.memory_space<vmem>>, vector<8x16xf32>,
    return
  }
  func.func @transform_0(%arg0: i32) -> (i32, i32) {
    %c0_i32 = arith.constant 0 : i32
    %c0_i32_0 = arith.constant 0 : i32
    return %arg0, %c0_i32 : i32, i32
  }
  func.func @transform_1(%arg0: i32) -> (i32, i32) {
    %c0_i32 = arith.constant 0 : i32
    %c0_i32_0 = arith.constant 0 : i32
    %c0_i32_1 = arith.constant 0 : i32
    return %c0_i32, %c0_i32_0 : i32, i32
  }
  func.func @transform_2(%arg0: i32) -> (i32, i32) {
    %c0_i32 = arith.constant 0 : i32
    %c0_i32_0 = arith.constant 0 : i32
    %c0_i32_1 = arith.constant 0 : i32
    return %c0_i32, %c0_i32_0 : i32, i32
  }
  func.func @transform_3(%arg0: i32) -> (i32, i32) {
    %c0_i32 = arith.constant 0 : i32
    %c0_i32_0 = arith.constant 0 : i32
    %c0_i32_1 = arith.constant 0 : i32
    return %c0_i32, %c0_i32_0 : i32, i32
  }
  func.func @transform_4(%arg0: i32) -> (i32, i32) {
    %c0_i32 = arith.constant 0 : i32
    %c0_i32_0 = arith.constant 0 : i32
    %c0_i32_1 = arith.constant 0 : i32
    return %c0_i32, %c0_i32_0 : i32, i32
  }
  func.func @transform_5(%arg0: i32) -> (i32, i32) {
    %c0_i32 = arith.constant 0 : i32
    %c0_i32_0 = arith.constant 0 : i32
    %c0_i32_1 = arith.constant 0 : i32
    return %c0_i32, %c0_i32_0 : i32, i32
  }
  func.func @transform_6(%arg0: i32) -> (i32, i32) {
    %c0_i32 = arith.constant 0 : i32
    %c0_i32_0 = arith.constant 0 : i32
    %c0_i32_1 = arith.constant 0 : i32
    return %c0_i32, %c0_i32_0 : i32, i32
  }
  func.func @transform_7(%arg0: i32) -> (i32, i32) {
    %c0_i32 = arith.constant 0 : i32
    %c0_i32_0 = arith.constant 0 : i32
    return %arg0, %c0_i32 : i32, i32
  }
}

</mosaic_0001>

<bundles_post_ra>
// kernel: tpu_custom_call.1
= control target key start
LH: loop header
LB: loop body
LE: loop exit
PB: predicated region body
PF: predicated region fallthrough
CT: control target
= control target key end

     0   :  { %12 = vsyncpa [#allocation3], 0  ;;  %s629_s0 = inlined_call_operand.vmem [shape: f32[8,32], index: 0, kind: input, shape index: {}]   ;;  %s630_s1 = inlined_call_operand.hbm [shape: f32[32,64], index: 1, kind: input, shape index: {}]   ;;  %s631_s2 = inlined_call_operand.vmem [shape: f32[1,64], index: 2, kind: input, shape index: {}]   ;;  %s632_s3 = inlined_call_operand.vmem [shape: f32[64,64], index: 3, kind: input, shape index: {}]   ;;  %s633_s4 = inlined_call_operand.vmem [shape: f32[1,64], index: 4, kind: input, shape index: {}]   ;;  %s634_s5 = inlined_call_operand.vmem [shape: f32[64,16], index: 5, kind: input, shape index: {}]   ;;  %s635_s6 = inlined_call_operand.vmem [shape: f32[1,16], index: 6, kind: input, shape index: {}]   ;;  %s636_s7 = inlined_call_operand.hbm [shape: f32[8,16], index: 7, kind: output, shape index: {}]  }
   0x1   :  { %13 = vsyncpa [#allocation4], 0  ;;  %s495_s24 = smov [#allocation2]   ;;  %s447_s28 = scalar_lea.hbm %s630_s1, 512 }
   0x2   :  { %s21_s25 = sshll.u32 %s495_s24, 4  ;;  %p448_p0 = scmp.ne.s32.totalorder %s630_s1, %s447_s28  ;;  %s22_s25 = int_to_ptr.vmem [resolvable:$true] %s21_s25 }
   0x3   :  { %p451_p1 = scmp.lt.u32.totalorder %s447_s28, %s630_s1 }
   0x5   :  { %p453_p2 = pnand %p451_p1, %p448_p0 }
   0x7   :  { %456 = shalt.err (!%p453_p2)
}
   0x8   :  { %s457_s10 = scalar_lea.vmem %s22_s25, 512  ;;  %p462_p4 = scmp.lt.s32.totalorder %s22_s25, %s22_s25 }
   0x9   :  { %p458_p3 = scmp.ne.s32.totalorder %s22_s25, %s457_s10  ;;  %p463_p5 = scmp.lt.s32.totalorder %s457_s10, %s457_s10 }
   0xb   :  { %p464_p6 = por %p463_p5, %p462_p4 }
   0xd   :  { %p465_p7 = pnand %p464_p6, %p458_p3 }
   0xf   :  { %468 = shalt.err (!%p465_p7)
}
  0x10   :  { %s496_s11 = smov 128   ;;  %s497_s12 = smov 8  }
  0x11   :  { %27 = dma.hbm_to_vmem [thread:$0]  %s630_s1, 512, %s22_s25, [#allocation3], %s496_s11, %s496_s11, %s497_s12  }
  0x12   :  { %491 = dma.done.wait [#allocation3], 512  }
  0x13   :  { %492 = vsyncadd [#allocation3], 4294966784  ;;  %v498_v0 = vmov 0.0|0.0   ;;  %vm499_vm0 = vmmov 0   ;;  %v500_v1 = vmov 0.0   ;;  %v42_v2 = vld [vmem:[#allocation2] sm:$0xff]  ;;  %v306_v47 = vlaneseq }
  0x14   :  { %408 = vmatprep.subr.bf16.mxu0 %v498_v0  ;;  %367 = vmatprep.mubr.msk.f32.mxu0 %vm499_vm0, %v500_v1  ;;  %v43_v3 = vld [vmem:[#allocation2 + $0x8] sm:$0xff]  ;;  %v44_v4 = vld [vmem:[#allocation2 + $0x10] sm:$0xff]  ;;  %v45_v6 = vld [vmem:[#allocation2 + $0x18] sm:$0xff]  ;;  %vm53_vm1 = vcmask 261120   ;;  %vm143_vm2 = vcmask 523264   ;;  %vm313_vm4 = vcmask 130048  }
  0x15   :  { %414 = vmatprep.subr.bf16.mxu1 %v498_v0  ;;  %386 = vmatprep.mubr.msk.f32.mxu1 %vm499_vm0, %v500_v1  ;;  %v409_v5 = vpack.c.bf16 %v43_v3, %v42_v2  ;;  %v128_v7 = vld [vmem:[%s632_s3] sm:$0xff]  ;;  %v129_v8 = vld [vmem:[%s632_s3 + $0x8] sm:$0xff]  ;;  %v130_v9 = vld [vmem:[%s632_s3 + $0x10] sm:$0xff]  ;;  %v412_v11 = vpack.c.bf16 %v45_v6, %v44_v4  ;;  %v307_v48 = vand.u32 127, %v306_v47 }
  0x16   :  { %v131_v10 = vld [vmem:[%s632_s3 + $0x18] sm:$0xff]  ;;  %v415_v12 = vpack.c.bf16 %v129_v8, %v128_v7  ;;  %v132_v14 = vld [vmem:[%s632_s3 + $0x20] sm:$0xff]  ;;  %v133_v15 = vld [vmem:[%s632_s3 + $0x28] sm:$0xff] }
  0x17   :  { %410 = vmatpush3.bf16.msra.mxu0 %v409_v5  ;;  %v418_v13 = vpack.c.bf16 %v131_v10, %v130_v9  ;;  %v41_v16 = vld [vmem:[%s629_s0] sm:$0xff]  ;;  %v421_v17 = vpack.c.bf16 %v133_v15, %v132_v14  ;;  %v134_v18 = vld [vmem:[%s632_s3 + $0x30] sm:$0xff]  ;;  %v135_v19 = vld [vmem:[%s632_s3 + $0x38] sm:$0xff]  ;;  %vm308_vm3 = vcmp.lt.s32.totalorder %v307_v48, 8 }
  0x18   :  { %411 = vmatprep.subr.bf16.mxu0 %v498_v0  ;;  %416 = vmatpush3.bf16.msra.mxu1 %v415_v12  ;;  %v424_v20 = vpack.c.bf16 %v135_v19, %v134_v18  ;;  %v218_v21 = vld [vmem:[%s634_s5] sm:$0xff]  ;;  %v219_v22 = vld [vmem:[%s634_s5 + $0x8] sm:$0xff]  ;;  %v220_v23 = vld [vmem:[%s634_s5 + $0x10] sm:$0xff] }
  0x19   :  { %417 = vmatprep.subr.bf16.mxu1 %v498_v0  ;;  %v427_v24 = vpack.c.bf16 %v219_v22, %v218_v21  ;;  %v221_v25 = vld [vmem:[%s634_s5 + $0x18] sm:$0xff]  ;;  %v222_v27 = vld [vmem:[%s634_s5 + $0x20] sm:$0xff]  ;;  %v223_v28 = vld [vmem:[%s634_s5 + $0x28] sm:$0xff] }
  0x1a   :  { %v430_v26 = vpack.c.bf16 %v221_v25, %v220_v23  ;;  %v433_v29 = vpack.c.bf16 %v223_v28, %v222_v27  ;;  %v330_v30 = vld [vmem:[%s631_s2] ss:$0 sm:$0xff]  ;;  %v224_v35 = vld [vmem:[%s634_s5 + $0x30] sm:$0xff]  ;;  %v225_v36 = vld [vmem:[%s634_s5 + $0x38] sm:$0xff]  ;;  %s501_s5 = smov [#allocation5]  }
  0x1b   :  { %413 = vmatpush3.bf16.msra.mxu0 %v412_v11  ;;  %v436_v37 = vpack.c.bf16 %v225_v36, %v224_v35  ;;  %v332_v38 = vld [vmem:[%s633_s4] ss:$0 sm:$0xff]  ;;  %s321_s27 = sshll.u32 %s501_s5, 4  ;;  %s322_s27 = int_to_ptr.vmem [resolvable:$true] %s321_s27 }
  0x1c   :  { %426 = vmatprep.subr.bf16.mxu0 %v498_v0  ;;  %419 = vmatpush3.bf16.msra.mxu1 %v418_v13  ;;  %v334_v43 = vld [vmem:[%s635_s6] ss:$0 sm:$0xff]  ;;  %s469_s4 = scalar_lea.vmem %s322_s27, 128  ;;  %p474_p9 = scmp.lt.s32.totalorder %s322_s27, %s322_s27 }
  0x1d   :  { %420 = vmatprep.subr.bf16.mxu1 %v498_v0  ;;  %p470_p8 = scmp.ne.s32.totalorder %s322_s27, %s469_s4  ;;  %p475_p10 = scmp.lt.s32.totalorder %s469_s4, %s469_s4 }
  0x1e   :  { %368 = vmatmul.mubr.msk.f32.vlgmr.msra.gmra.mrb[0].mxu0 %vm53_vm1, %v41_v16 }
  0x1f   :  { %405 = vmatprep.mubr.msk.f32.mxu0 %vm499_vm0, %v500_v1  ;;  %428 = vmatpush3.bf16.msra.mxu0 %v427_v24  ;;  %p476_p11 = por %p475_p10, %p474_p9 }
  0x20   :  { %422 = vmatpush3.bf16.msra.mxu1 %v421_v17  ;;  %429 = vmatprep.subr.bf16.mxu0 %v498_v0 }
  0x21   :  { %423 = vmatprep.subr.bf16.mxu1 %v498_v0  ;;  %p477_p12 = pnand %p476_p11, %p470_p8 }
  0x23   :  { %431 = vmatpush3.bf16.msra.mxu0 %v430_v26 }
  0x24   :  { %425 = vmatpush3.bf16.msra.mxu1 %v424_v20  ;;  %432 = vmatprep.subr.bf16.mxu0 %v498_v0 }
  0x27   :  { %434 = vmatpush3.bf16.msra.mxu0 %v433_v29 }
  0x28   :  { %435 = vmatprep.subr.bf16.mxu0 %v498_v0 }
  0x2b   :  { %437 = vmatpush3.bf16.msra.mxu0 %v436_v37 }
  0xf1   :  { %v123_v31 = vpop.f32.mrb[0].mxu0 }
  0xf2   :  { %v124_v32 = vadd.f32 %v330_v30, %v123_v31  ;;  %v369_v33 = vpop.f32.mrb[1].mxu0 }
  0xf4   :  { %v127_v34 = vmax.f32 %v124_v32, 0.0 }
  0xf6   :  { %387 = vmatmul.mubr.msk.f32.vlgmr.msra.gmra.mrb[0].mxu1 %vm143_vm2, %v127_v34 }
 0x1c9   :  { %v213_v39 = vpop.f32.mrb[0].mxu1 }
 0x1ca   :  { %v214_v40 = vadd.f32 %v332_v38, %v213_v39  ;;  %v388_v41 = vpop.f32.mrb[1].mxu1 }
 0x1cc   :  { %v217_v42 = vmax.f32 %v214_v40, 0.0 }
 0x1ce   :  { %406 = vmatmul.mubr.msk.f32.vlgmr.msra.gmra.mrb[2].mxu0 %vm143_vm2, %v217_v42 }
 0x2a1   :  { %v302_v44 = vpop.f32.mrb[2].mxu0 }
 0x2a2   :  { %v303_v45 = vadd.f32 %v334_v43, %v302_v44  ;;  %v407_v46 = vpop.f32.mrb[3].mxu0 }
 0x2a4   :  { %445 = vtanh.f32 %v303_v45  ;;  %v310_v49 = vmax.f32 %v303_v45, 0.0 }
 0x2a6   :  { %v311_v50 = vsub.f32 0.0, %v310_v49 }
 0x2ae   :  { %v446_v51 = vpop.eup %445 }
 0x2af   :  { %v312_v52 = vsel %vm308_vm3, %v446_v51, %v311_v50 }
 0x2b0   :  { %314 = vst.msk [vmem:[#allocation5] sm:$0xff] %vm313_vm4, %v312_v52 }
 0x2b1   :  { %480 = shalt.err (!%p477_p12)
}
 0x2b2   :  { %s481_s29 = scalar_lea.hbm %s636_s7, 128 }
 0x2b3   :  { %p482_p13 = scmp.ne.s32.totalorder %s636_s7, %s481_s29  ;;  %p485_p0 = scmp.lt.u32.totalorder %s481_s29, %s636_s7 }
 0x2b5   :  { %p487_p1 = pnand %p485_p0, %p482_p13 }
 0x2b7   :  { %490 = shalt.err (!%p487_p1)
}
 0x2b8   :  { %324 = dma.vmem_to_hbm [thread:$0]  %s322_s27, 128, %s636_s7, [#allocation4]  }
 0x2b9   :  { %493 = dma.done.wait [#allocation4], 128  }
 0x2ba   :  { %494 = vsyncadd [#allocation4], 4294967168 }
 0x2bb   :  { %328 = vsyncpa [#allocation3], 1 }
 0x2bc   :  { %329 = vsyncpa [#allocation4], 1 }

</bundles_post_ra>
